<compile_context>
chip_gen: v7x
topology: tpu7x:2x2x1
jax: 0.10.0
libtpu: 0.0.40
codegen_flags: <defaults>
</compile_context>

<pallas_src>
import jax
import jax.numpy as jnp
from jax.experimental import pallas as pl
from jax.experimental.pallas import tpu as pltpu  # noqa: F401  (standard preamble)

HIDDEN1 = 256
HIDDEN2 = 128
# Packed aux-param layout (f32 lanes): [b1 | b2 | w3 | b3 | zero pad] -> 640 lanes.
_OFF_B1 = 0
_OFF_B2 = HIDDEN1                       # 256
_OFF_W3 = HIDDEN1 + HIDDEN2             # 384
_OFF_B3 = HIDDEN1 + 2 * HIDDEN2         # 512
PACKED_W = 640                          # padded to a multiple of 128 lanes


def _mlp_row0_kernel(x_ref, w1_ref, w2_ref, p_ref, o_ref):
    # x_ref: (Bk, D) f32   w1_ref: (D, 256) f32   w2_ref: (256, 128) bf16
    # p_ref: (1, 640) f32 packed [b1|b2|w3|b3|pad]   o_ref: (1, 1) f32
    x = x_ref[0:1, :]                                   # row 0 only (free static view)

    b1 = p_ref[:, _OFF_B1:_OFF_B1 + HIDDEN1]            # (1, 256)
    b2 = p_ref[:, _OFF_B2:_OFF_B2 + HIDDEN2]            # (1, 128)
    w3 = p_ref[:, _OFF_W3:_OFF_W3 + HIDDEN2]            # (1, 128)
    b3 = p_ref[:, _OFF_B3:_OFF_B3 + 1]                  # (1, 1)

    # fc1: f32 MXU matmul (tiny), f32 bias/ReLU.
    h1 = jnp.dot(x, w1_ref[...], preferred_element_type=jnp.float32) + b1
    h1 = jnp.maximum(h1, 0.0)

    # fc2: bf16 MXU operands, f32 accumulation, f32 bias/ReLU.
    h2 = (
        jnp.dot(h1.astype(jnp.bfloat16), w2_ref[...], preferred_element_type=jnp.float32)
        + b2
    )
    h2 = jnp.maximum(h2, 0.0)

    # fc3 (128 -> 1): VPU multiply + XLU lane reduce (no lane-sparse MXU op).
    h3 = jnp.sum(h2 * w3, axis=-1, keepdims=True) + b3

    # Sigmoid on the EUP (exp path).
    o_ref[...] = jax.nn.sigmoid(h3).astype(o_ref.dtype)


def binary_classification_forward(x, params):
    """x: (B, input_size) float32. Returns shape (1,) == sigmoid(fc3(...))[0, :]."""
    w1, w2, packed = params
    B, D = x.shape

    # Only row 0 is ever returned by the model.  For small batches pass x whole
    # (no extra XLA slice op; the few extra rows DMA'd are negligible).  For
    # large batches slice first so we never move unused rows to VMEM.
    x_in = x if B <= 8 else x[0:1, :]
    Bk = x_in.shape[0]

    flops = 2 * (D * HIDDEN1 + HIDDEN1 * HIDDEN2) + 2 * HIDDEN2
    bytes_accessed = (
        x_in.size * 4
        + w1.size * 4
        + w2.size * w2.dtype.itemsize
        + packed.size * 4
        + 4  # output
    )

    out = pl.pallas_call(
        _mlp_row0_kernel,
        out_shape=jax.ShapeDtypeStruct((1, 1), jnp.float32),
        in_specs=[
            pl.BlockSpec((Bk, D), lambda: (0, 0)),
            pl.BlockSpec(w1.shape, lambda: (0, 0)),
            pl.BlockSpec(w2.shape, lambda: (0, 0)),
            pl.BlockSpec(packed.shape, lambda: (0, 0)),
        ],
        out_specs=pl.BlockSpec((1, 1), lambda: (0, 0)),
        grid=(),
        cost_estimate=pl.CostEstimate(
            flops=flops, transcendentals=1, bytes_accessed=bytes_accessed
        ),
    )(x_in, w1, w2, packed)

    # (1, 1) -> (1,), metadata-only reshape (matches PyTorch's x[0, :]).
    return out.reshape((1,))


def init_params(key, input_size):
    """Deterministic init mimicking nn.Linear defaults (uniform +-1/sqrt(fan_in)).

    Returns (w1 f32 (D,256), w2 bf16 (256,128), packed f32 (1,640)) where
    packed = [b1 | b2 | w3-row | b3 | zero pad].
    """

    def linear(key, fan_in, fan_out):
        kw, kb = jax.random.split(key)
        bound = 1.0 / jnp.sqrt(float(fan_in))
        w = jax.random.uniform(kw, (fan_in, fan_out), jnp.float32, -bound, bound)
        b = jax.random.uniform(kb, (fan_out,), jnp.float32, -bound, bound)
        return w, b

    k1, k2, k3 = jax.random.split(key, 3)
    w1, b1 = linear(k1, input_size, HIDDEN1)
    w2, b2 = linear(k2, HIDDEN1, HIDDEN2)
    w3, b3 = linear(k3, HIDDEN2, 1)          # w3: (128, 1), b3: (1,)

    w2 = w2.astype(jnp.bfloat16)             # bulk of the bytes -> bf16 MXU operand

    packed = jnp.zeros((1, PACKED_W), jnp.float32)
    packed = packed.at[0, _OFF_B1:_OFF_B1 + HIDDEN1].set(b1)
    packed = packed.at[0, _OFF_B2:_OFF_B2 + HIDDEN2].set(b2)
    packed = packed.at[0, _OFF_W3:_OFF_W3 + HIDDEN2].set(w3[:, 0])
    packed = packed.at[0, _OFF_B3].set(b3[0])
    return (w1, w2, packed)


def _reference_forward(x, params):
    """Pure-JAX f32 reference of the PyTorch module (row 0 only)."""
    w1, w2, packed = params
    b1 = packed[0, _OFF_B1:_OFF_B1 + HIDDEN1]
    b2 = packed[0, _OFF_B2:_OFF_B2 + HIDDEN2]
    w3 = packed[0, _OFF_W3:_OFF_W3 + HIDDEN2]
    b3 = packed[0, _OFF_B3]
    h1 = jnp.maximum(x[0] @ w1 + b1, 0.0)
    h2 = jnp.maximum(h1 @ w2.astype(jnp.float32) + b2, 0.0)
    h3 = jnp.sum(h2 * w3) + b3
    return jax.nn.sigmoid(h3).reshape((1,))


if __name__ == "__main__":
    key = jax.random.PRNGKey(0)
    k_in, k_param = jax.random.split(key)

    batch = 2
    input_size = 32
    x = jax.random.normal(k_in, (batch, input_size), dtype=jnp.float32)

    params = init_params(k_param, input_size)

    out = binary_classification_forward(x, params)
    out = jax.block_until_ready(out)

    # sanity: shape (1,), sigmoid output in (0, 1), close to the f32 reference
    # (loose tolerance: w2 / the fc2 activation are bf16 on the MXU path).
    assert out.shape == (1,)
    assert bool(jnp.all((out > 0.0) & (out < 1.0)))
    ref = _reference_forward(x, params)
    assert bool(jnp.all(jnp.abs(out - ref) < 5e-2))

    print("KERNEL_OK")
</pallas_src>

<mosaic_0001>
module attributes {stable_mosaic.version = 11 : i64} {
  func.func @_mlp_row0_kernel(%arg0: memref<2x32xf32, #tpu.memory_space<vmem>>, %arg1: memref<32x256xf32, #tpu.memory_space<vmem>>, %arg2: memref<256x128xbf16, #tpu.memory_space<vmem>>, %arg3: memref<1x640xf32, #tpu.memory_space<vmem>>, %arg4: memref<1x1xf32, #tpu.memory_space<vmem>>) attributes {dimension_semantics = [], scalar_prefetch = 0 : i64, scratch_operands = 0 : i64, tpu.core_type = #tpu.core_type<tc>} {
    %c0 = arith.constant 0 : index
    %c0_0 = arith.constant 0 : index
    %0 = vector.load %arg0[%c0, %c0_0] : memref<2x32xf32, #tpu.memory_space<vmem>>, vector<1x32xf32>
    %c0_1 = arith.constant 0 : index
    %c0_2 = arith.constant 0 : index
    %1 = vector.load %arg3[%c0_1, %c0_2] : memref<1x640xf32, #tpu.memory_space<vmem>>, vector<1x256xf32>
    %c0_3 = arith.constant 0 : index
    %c256 = arith.constant 256 : index
    %2 = vector.load %arg3[%c0_3, %c256] : memref<1x640xf32, #tpu.memory_space<vmem>>, vector<1x128xf32>
    %c0_4 = arith.constant 0 : index
    %c384 = arith.constant 384 : index
    %3 = vector.load %arg3[%c0_4, %c384] : memref<1x640xf32, #tpu.memory_space<vmem>>, vector<1x128xf32>
    %c0_5 = arith.constant 0 : index
    %c512 = arith.constant 512 : index
    %4 = vector.load %arg3[%c0_5, %c512] : memref<1x640xf32, #tpu.memory_space<vmem>>, vector<1x1xf32>
    %c0_6 = arith.constant 0 : index
    %c0_7 = arith.constant 0 : index
    %5 = vector.load %arg1[%c0_6, %c0_7] : memref<32x256xf32, #tpu.memory_space<vmem>>, vector<32x256xf32>
    %cst = arith.constant dense<0.000000e+00> : vector<1x256xf32>
    %6 = tpu.matmul %0, %5, %cst {dimension_numbers = #tpu.dot_dimension_numbers<[1], [0], [0], [1], [0, 0, 1, 1], [], []>} : vector<1x32xf32>, vector<32x256xf32>, vector<1x256xf32> -> vector<1x256xf32>
    %7 = arith.addf %6, %1 : vector<1x256xf32>
    %cst_8 = arith.constant 0.000000e+00 : f32
    %8 = vector.broadcast %cst_8 : f32 to vector<1x256xf32>
    %9 = arith.maximumf %7, %8 : vector<1x256xf32>
    %10 = arith.truncf %9 : vector<1x256xf32> to vector<1x256xbf16>
    %c0_9 = arith.constant 0 : index
    %c0_10 = arith.constant 0 : index
    %11 = vector.load %arg2[%c0_9, %c0_10] : memref<256x128xbf16, #tpu.memory_space<vmem>>, vector<256x128xbf16>
    %cst_11 = arith.constant dense<0.000000e+00> : vector<1x128xf32>
    %12 = tpu.matmul %10, %11, %cst_11 {dimension_numbers = #tpu.dot_dimension_numbers<[1], [0], [0], [1], [0, 0, 1, 1], [], []>} : vector<1x256xbf16>, vector<256x128xbf16>, vector<1x128xf32> -> vector<1x128xf32>
    %13 = arith.addf %12, %2 : vector<1x128xf32>
    %cst_12 = arith.constant 0.000000e+00 : f32
    %14 = vector.broadcast %cst_12 : f32 to vector<1x128xf32>
    %15 = arith.maximumf %13, %14 : vector<1x128xf32>
    %16 = arith.mulf %15, %3 : vector<1x128xf32>
    %cst_13 = arith.constant dense<0.000000e+00> : vector<1xf32>
    %17 = vector.multi_reduction <add>, %16, %cst_13 [1] : vector<1x128xf32> to vector<1xf32>
    %18 = vector.shape_cast %17 : vector<1xf32> to vector<1x1xf32>
    %19 = arith.addf %18, %4 : vector<1x1xf32>
    %20 = arith.negf %19 : vector<1x1xf32>
    %21 = math.exp %20 : vector<1x1xf32>
    %cst_14 = arith.constant 1.000000e+00 : f32
    %22 = vector.broadcast %cst_14 : f32 to vector<1x1xf32>
    %23 = arith.addf %22, %21 : vector<1x1xf32>
    %24 = arith.divf %22, %23 : vector<1x1xf32>
    %c0_15 = arith.constant 0 : index
    %c0_16 = arith.constant 0 : index
    %25 = vector.load %arg4[%c0_15, %c0_16] : memref<1x1xf32, #tpu.memory_space<vmem>>, vector<1x1xf32>
    tpu.vector_store %arg4[%c0_15, %c0_16], %24 {strides = array<i32>} : memref<1x1xf32, #tpu.memory_space<vmem>>, vector<1x1xf32>,
    return
  }
}

</mosaic_0001>

<bundles_post_ra>
// kernel: tpu_custom_call.1
= control target key start
LH: loop header
LB: loop body
LE: loop exit
PB: predicated region body
PF: predicated region fallthrough
CT: control target
= control target key end

     0   :  { %9 = vsyncpa [#allocation3], 0  ;;  %s625_s0 = inlined_call_operand.hbm [shape: f32[2,32], index: 0, kind: input, shape index: {}]   ;;  %s626_s1 = inlined_call_operand.hbm [shape: f32[32,256], index: 1, kind: input, shape index: {}]   ;;  %s627_s2 = inlined_call_operand.hbm [shape: bf16[256,128], index: 2, kind: input, shape index: {}]   ;;  %s628_s3 = inlined_call_operand.vmem [shape: f32[1,640], index: 3, kind: input, shape index: {}]   ;;  %s629_s4 = inlined_call_operand.hbm [shape: f32[1,1], index: 4, kind: output, shape index: {}]  }
   0x1   :  { %10 = vsyncpa [#allocation6], 0 }
   0x2   :  { %11 = vsyncpa [#allocation4], 0  ;;  %s531_s15 = smov [#allocation5]   ;;  %s437_s19 = scalar_lea.hbm %s626_s1, 1024 }
   0x3   :  { %s27_s16 = sshll.u32 %s531_s15, 4  ;;  %p438_p0 = scmp.ne.s32.totalorder %s626_s1, %s437_s19  ;;  %s28_s16 = int_to_ptr.vmem [resolvable:$true] %s27_s16 }
   0x4   :  { %p441_p1 = scmp.lt.u32.totalorder %s437_s19, %s626_s1 }
   0x6   :  { %p443_p2 = pnand %p441_p1, %p438_p0 }
   0x8   :  { %446 = shalt.err (!%p443_p2)
}
   0x9   :  { %s447_s24 = scalar_lea.vmem %s28_s16, 1024  ;;  %p452_p4 = scmp.lt.s32.totalorder %s28_s16, %s28_s16 }
   0xa   :  { %p448_p3 = scmp.ne.s32.totalorder %s28_s16, %s447_s24  ;;  %p453_p5 = scmp.lt.s32.totalorder %s447_s24, %s447_s24 }
   0xc   :  { %p454_p6 = por %p453_p5, %p452_p4 }
   0xe   :  { %p455_p7 = pnand %p454_p6, %p448_p3 }
  0x10   :  { %458 = shalt.err (!%p455_p7)
}
  0x11   :  { %s532_s25 = smov 256   ;;  %s533_s26 = smov 16  }
  0x12   :  { %33 = dma.hbm_to_vmem [thread:$0]  %s626_s1, 1024, %s28_s16, [#allocation6], %s532_s25, %s532_s25, %s533_s26  }
  0x13   :  { %s534_s29 = smov [#allocation2]   ;;  %s535_s5 = smov [#allocation7]  }
  0x14   :  { %s18_s30 = sshll.u32 %s534_s29, 4  ;;  %s39_s6 = sshll.u32 %s535_s5, 4  ;;  %s19_s30 = int_to_ptr.vmem [resolvable:$true] %s18_s30  ;;  %s40_s6 = int_to_ptr.vmem [resolvable:$true] %s39_s6 }
  0x15   :  { %s459_s9 = scalar_lea.hbm %s625_s0, 32 }
  0x16   :  { %p460_p8 = scmp.ne.s32.totalorder %s625_s0, %s459_s9  ;;  %p463_p9 = scmp.lt.u32.totalorder %s459_s9, %s625_s0 }
  0x18   :  { %p465_p10 = pnand %p463_p9, %p460_p8 }
  0x1a   :  { %468 = shalt.err (!%p465_p10)
}
  0x1b   :  { %s469_s1 = scalar_lea.vmem %s19_s30, 32  ;;  %p474_p12 = scmp.lt.s32.totalorder %s19_s30, %s19_s30 }
  0x1c   :  { %p470_p11 = scmp.ne.s32.totalorder %s19_s30, %s469_s1  ;;  %p475_p13 = scmp.lt.s32.totalorder %s469_s1, %s469_s1 }
  0x1e   :  { %p476_p0 = por %p475_p13, %p474_p12 }
  0x20   :  { %p477_p1 = pnand %p476_p0, %p470_p11 }
  0x22   :  { %480 = shalt.err (!%p477_p1)
}
  0x23   :  { %21 = dma.hbm_to_vmem [thread:$0]  %s625_s0, 32, %s19_s30, [#allocation3]  }
  0x24   :  { %s481_s18 = scalar_lea.hbm %s627_s2, 2048 }
  0x25   :  { %p482_p2 = scmp.ne.s32.totalorder %s627_s2, %s481_s18  ;;  %p485_p3 = scmp.lt.u32.totalorder %s481_s18, %s627_s2 }
  0x27   :  { %p487_p4 = pnand %p485_p3, %p482_p2 }
  0x29   :  { %490 = shalt.err (!%p487_p4)
}
  0x2a   :  { %s491_s23 = scalar_lea.vmem %s40_s6, 2048  ;;  %p496_p6 = scmp.lt.s32.totalorder %s40_s6, %s40_s6 }
  0x2b   :  { %p492_p5 = scmp.ne.s32.totalorder %s40_s6, %s491_s23  ;;  %p497_p7 = scmp.lt.s32.totalorder %s491_s23, %s491_s23 }
  0x2d   :  { %p498_p8 = por %p497_p7, %p496_p6 }
  0x2f   :  { %p499_p9 = pnand %p498_p8, %p492_p5 }
  0x31   :  { %502 = shalt.err (!%p499_p9)
}
  0x32   :  { %s536_s0 = smov 64   ;;  %s537_s24 = smov 4  }
  0x33   :  { %45 = dma.hbm_to_vmem [thread:$0]  %s627_s2, 2048, %s40_s6, [#allocation6], %s536_s0, %s536_s0, %s537_s24  }
  0x34   :  { %525 = dma.done.wait [#allocation3], 32  }
  0x35   :  { %526 = vsyncadd [#allocation3], 4294967264 }
  0x36   :  { %527 = dma.done.wait [#allocation6], 3072  }
  0x37   :  { %528 = vsyncadd [#allocation6], 4294964224  ;;  %v538_v0 = vmov 0.0   ;;  %v64_v1 = vld [vmem:[#allocation5 + $0x8] sm:$0xff]  ;;  %v66_v2 = vld [vmem:[#allocation5 + $0x18] sm:$0xff]  ;;  %vm82_vm0 = vcmask 261120   ;;  %v72_v30 = vlaneseq }
  0x38   :  { %150 = vmatprep.mubr.f32.mxu0 %v538_v0  ;;  %v63_v3 = vld [vmem:[#allocation5] sm:$0xff]  ;;  %v400_v4 = vpack.c.bf16 %v66_v2, %v64_v1  ;;  %v65_v5 = vld [vmem:[#allocation5 + $0x10] sm:$0xff]  ;;  %v68_v6 = vld [vmem:[#allocation5 + $0x28] sm:$0xff]  ;;  %vm331_vm1 = vcmask 1040384   ;;  %s539_s8 = smov [#allocation8]   ;;  %vm342_vm2 = vcmask 0  }
  0x39   :  { %v70_v7 = vld [vmem:[#allocation5 + $0x38] sm:$0xff]  ;;  %v402_v8 = vpack.c.bf16 %v65_v5, %v63_v3  ;;  %v67_v10 = vld [vmem:[#allocation5 + $0x20] sm:$0xff]  ;;  %v69_v11 = vld [vmem:[#allocation5 + $0x30] sm:$0xff]  ;;  %v73_v31 = vshrl.u32 %v72_v30, 7  ;;  %s350_s9 = sshll.u32 %s539_s8, 4  ;;  %s351_s9 = int_to_ptr.vmem [resolvable:$true] %s350_s9 }
  0x3a   :  { %v404_v9 = vpack.c.bf16 %v70_v7, %v68_v6  ;;  %401 = vmatprep.subr.bf16.mxu0 %v400_v4  ;;  %v417_v12 = vld [vmem:[#allocation7 + $0x40] sm:$0xff]   ;;  %v406_v13 = vpack.c.bf16 %v69_v11, %v67_v10  ;;  %v419_v15 = vld [vmem:[#allocation7 + $0x48] sm:$0xff]   ;;  %v421_v17 = vld [vmem:[#allocation7 + $0x50] sm:$0xff]   ;;  %s503_s10 = scalar_lea.vmem %s351_s9, 16  ;;  %s507_s11 = scalar_lea.vmem %s351_s9, 32 }
  0x3b   :  { %403 = vmatpush1.bf16.msra.mxu0 %v402_v8  ;;  %v418_v14 = vld [vmem:[#allocation7] sm:$0xff]   ;;  %378 = vmatprep.subr.bf16.mxu1 %v417_v12  ;;  %v420_v16 = vld [vmem:[#allocation7 + $0x8] sm:$0xff]   ;;  %v58_v18 = vld [vmem:[#allocation2] sm:$0x1]  ;;  %v74_v32 = vsub.s32 0, %v73_v31  ;;  %v78_v34 = vsub.s32 1, %v73_v31  ;;  %p504_p10 = scmp.ne.s32.totalorder %s351_s9, %s503_s10  ;;  %p508_p11 = scmp.lt.s32.totalorder %s351_s9, %s351_s9 }
  0x3c   :  { %405 = vmatprep.subr.bf16.mxu0 %v404_v9  ;;  %379 = vmatpush3.bf16.msra.mxu1 %v418_v14  ;;  %v422_v19 = vld [vmem:[#allocation7 + $0x10] sm:$0xff]   ;;  %v423_v20 = vld [vmem:[#allocation7 + $0x58] sm:$0xff]   ;;  %v425_v22 = vld [vmem:[#allocation7 + $0x60] sm:$0xff]   ;;  %p509_p12 = scmp.lt.s32.totalorder %s507_s11, %s503_s10 }
  0x3d   :  { %380 = vmatprep.subr.bf16.mxu1 %v419_v15  ;;  %v424_v21 = vld [vmem:[#allocation7 + $0x18] sm:$0xff]   ;;  %v426_v23 = vld [vmem:[#allocation7 + $0x20] sm:$0xff]   ;;  %v427_v24 = vld [vmem:[#allocation7 + $0x68] sm:$0xff]  }
  0x3e   :  { %v428_v25 = vld [vmem:[#allocation7 + $0x28] sm:$0xff]   ;;  %v429_v26 = vld [vmem:[#allocation7 + $0x70] sm:$0xff]   ;;  %v431_v28 = vld [vmem:[#allocation7 + $0x78] sm:$0xff]   ;;  %p510_p13 = por %p509_p12, %p508_p11 }
  0x3f   :  { %407 = vmatpush1.bf16.msra.mxu0 %v406_v13  ;;  %v430_v27 = vld [vmem:[#allocation7 + $0x30] sm:$0xff]   ;;  %v432_v29 = vld [vmem:[#allocation7 + $0x38] sm:$0xff]  }
  0x40   :  { %381 = vmatpush3.bf16.msra.mxu1 %v420_v16  ;;  %v59_v33 = vld [vmem:[%s628_s3] sm:$0x3]  ;;  %v60_v46 = vld [vmem:[%s628_s3 + $0x2] sm:$0x1]  ;;  %v61_v52 = vld [vmem:[%s628_s3 + $0x3] sm:$0x1]  ;;  %p511_p0 = pnand %p510_p13, %p504_p10 }
  0x41   :  { %382 = vmatprep.subr.bf16.mxu1 %v421_v17  ;;  %v75_v35 = vrot.slane %v59_v33, %v74_v32  ;;  %v79_v36 = vrot.slane %v59_v33, %v78_v34  ;;  %v62_v56 = vld [vmem:[%s628_s3 + $0x4] sm:$0x1] }
  0x42   :  { %360 = vmatmul.mubr.msk.f32.vlgmr.msra.gmra.mrb[0].mxu0 %vm82_vm0, %v58_v18 }
  0x44   :  { %383 = vmatpush3.bf16.msra.mxu1 %v422_v19 }
  0x45   :  { %384 = vmatprep.subr.bf16.mxu1 %v423_v20 }
  0x48   :  { %385 = vmatpush3.bf16.msra.mxu1 %v424_v21 }
  0x49   :  { %386 = vmatprep.subr.bf16.mxu1 %v425_v22 }
  0x4c   :  { %387 = vmatpush3.bf16.msra.mxu1 %v426_v23 }
  0x4d   :  { %388 = vmatprep.subr.bf16.mxu1 %v427_v24 }
  0x50   :  { %389 = vmatpush3.bf16.msra.mxu1 %v428_v25 }
  0x51   :  { %390 = vmatprep.subr.bf16.mxu1 %v429_v26 }
  0x54   :  { %391 = vmatpush3.bf16.msra.mxu1 %v430_v27 }
  0x55   :  { %392 = vmatprep.subr.bf16.mxu1 %v431_v28 }
  0x58   :  { %393 = vmatpush3.bf16.msra.mxu1 %v432_v29 }
 0x115   :  { %v152_v37 = vpop.f32.mrb[0].mxu0 }
 0x116   :  { %v153_v38 = vadd.f32 %v152_v37, %v75_v35  ;;  %v154_v39 = vpop.f32.mrb[1].mxu0 }
 0x117   :  { %v155_v40 = vadd.f32 %v154_v39, %v79_v36 }
 0x118   :  { %v157_v41 = vmax.f32 %v153_v38, 0.0 }
 0x119   :  { %v158_v42 = vmax.f32 %v155_v40, 0.0 }
 0x11a   :  { %v159_v44 = vpack.c.bf16 %v157_v41, %v157_v41 }
 0x11b   :  { %v160_v43 = vpack.c.bf16 %v158_v42, %v158_v42 }
 0x11d   :  { %321 = vmatprep.mubr.bf16.mxu1 %v160_v43 }
 0x11e   :  { %322 = vmatmul.mubr.bf16.vlgmr.msra.gmra.mrb[0].mxu1 %v159_v44 }
 0x1f1   :  { %v394_v45 = vpop.f32.mrb[0].mxu1 }
 0x1f2   :  { %v395_v47 = vpop.f32.mrb[1].mxu1 }
 0x1f3   :  { %v396_v48 = vadd.f32 %v395_v47, %v394_v45  ;;  %v397_v49 = vpop.f32.mrb[2].mxu1 }
 0x1f4   :  { %v398_v50 = vpop.f32.mrb[3].mxu1 }
 0x1f5   :  { %v324_v51 = vadd.f32 %v396_v48, %v60_v46 }
 0x1f7   :  { %v329_v53 = vmax.f32 %v324_v51, 0.0 }
 0x1f9   :  { %v330_v54 = vmul.f32 %v329_v53, %v61_v52 }
 0x1fb   :  { %v332_v55 = vsel %vm331_vm1, %v330_v54, 0.0 }
 0x1fc   :  { %333 = vadd.xlane.f32.xlu0 %v332_v55 }
 0x289   :  { %v334_v57 = vpop.xlane.xlu0 %333 }
 0x28a   :  { %v335_v58 = vadd.f32 %v334_v57, %v62_v56 }
 0x28c   :  { %v377_v59 = vmul.f32 -1.442695, %v335_v58 }
 0x28e   :  { %433 = vpow2.f32 %v377_v59 }
 0x298   :  { %v434_v60 = vpop.eup %433 }
 0x299   :  { %v339_v61 = vadd.f32 1.0, %v434_v60 }
 0x29b   :  { %435 = vrcp.f32 %v339_v61 }
 0x2a5   :  { %v436_v62 = vpop.eup %435 }
 0x2a6   :  { %343 = vst.msk [vmem:[#allocation8] sm:$0x1] %vm342_vm2, %v436_v62 }
 0x2a7   :  { %514 = shalt.err (!%p511_p0)
}
 0x2a8   :  { %s515_s13 = scalar_lea.hbm %s629_s4, 16 }
 0x2a9   :  { %p516_p1 = scmp.ne.s32.totalorder %s629_s4, %s515_s13  ;;  %p519_p2 = scmp.lt.u32.totalorder %s515_s13, %s629_s4 }
 0x2ab   :  { %p521_p3 = pnand %p519_p2, %p516_p1 }
 0x2ad   :  { %524 = shalt.err (!%p521_p3)
}
 0x2ae   :  { %353 = dma.vmem_to_hbm [thread:$0]  %s351_s9, 16, %s629_s4, [#allocation4]  }
 0x2af   :  { %529 = dma.done.wait [#allocation4], 16  }
 0x2b0   :  { %530 = vsyncadd [#allocation4], 4294967280 }
 0x2b1   :  { %357 = vsyncpa [#allocation3], 1 }
 0x2b2   :  { %358 = vsyncpa [#allocation6], 1 }
 0x2b3   :  { %359 = vsyncpa [#allocation4], 1 }

</bundles_post_ra>
